<compile_context>
chip_gen: v6e
topology: v6e:2x2x1
jax: 0.10.0
libtpu: 0.0.40
codegen_flags: <defaults>
</compile_context>

<pallas_src>
import jax
import jax.numpy as jnp
from jax.experimental import pallas as pl
from jax.experimental.pallas import tpu as pltpu


def _round_up(x, m):
    return (x + m - 1) // m * m


def _vmem_capacity_bytes():
    try:
        info = pltpu.get_tpu_info()
        return int(info.vmem_capacity_bytes)
    except Exception:
        return 128 << 20  # v5e/v6e class fallback


def _default_tiles(vmem_cap):
    if vmem_cap <= (64 << 20):
        # v7x-class: 64 MiB VMEM per TC, 2 TCs per chip -> keep footprint modest
        # so both cores can be fed and headroom remains.
        return 512, 512, 1024
    # v5e / v6e class: 128 MiB VMEM -> large output tiles to cut HBM re-streaming.
    return 1024, 1024, 1024


def _vmem_limit(footprint_bytes, vmem_cap):
    limit = int(footprint_bytes * 1.3) + (2 << 20)   # ~30% headroom + slack
    limit = max(limit, 32 << 20)
    return min(limit, int(vmem_cap * 0.9), 128 << 20)


# ---------------------------------------------------------------------------
# Fast path: small shared weight kept fully resident in VMEM.
# ---------------------------------------------------------------------------
def _resident_weight_kernel(x_ref, w_ref, o_ref):
    o_ref[...] = jnp.dot(
        x_ref[...], w_ref[...], preferred_element_type=jnp.float32
    ).astype(o_ref.dtype)


def _resident_weight_matmul(x2, w, out_dtype, tm, vmem_cap):
    M, K = x2.shape
    _, N = w.shape
    bx, bw = x2.dtype.itemsize, w.dtype.itemsize
    bo = jnp.dtype(out_dtype).itemsize

    Mp = _round_up(M, tm)
    if Mp != M:
        x2 = jnp.pad(x2, ((0, Mp - M), (0, 0)))

    # 2x on the weight is conservative (constant block index -> single DMA, but
    # the pipeline may still hold double buffers).
    footprint = 2 * K * N * bw + 2 * tm * K * bx + 2 * tm * N * bo
    vmem_limit = _vmem_limit(footprint, vmem_cap)

    out = pl.pallas_call(
        _resident_weight_kernel,
        out_shape=jax.ShapeDtypeStruct((Mp, N), out_dtype),
        grid_spec=pltpu.PrefetchScalarGridSpec(
            num_scalar_prefetch=0,
            grid=(Mp // tm,),
            in_specs=[
                pl.BlockSpec((tm, K), lambda i: (i, 0)),  # x tile, streamed over M
                pl.BlockSpec((K, N), lambda i: (0, 0)),   # weight: VMEM-resident
            ],
            out_specs=pl.BlockSpec((tm, N), lambda i: (i, 0)),
        ),
        compiler_params=pltpu.CompilerParams(
            dimension_semantics=("parallel",),
            vmem_limit_bytes=vmem_limit,
        ),
        cost_estimate=pl.CostEstimate(
            flops=2 * Mp * K * N,
            transcendentals=0,
            bytes_accessed=Mp * K * bx + K * N * bw + Mp * N * bo,
        ),
    )(x2, w)

    if Mp != M:
        out = out[:M]
    return out


# ---------------------------------------------------------------------------
# General path: tiled MXU matmul, f32 accumulator resident across K.
# ---------------------------------------------------------------------------
def _matmul_kernel(x_ref, w_ref, o_ref, acc_ref):
    k = pl.program_id(2)
    partial = jnp.dot(x_ref[...], w_ref[...], preferred_element_type=jnp.float32)

    # First K step: write the product directly (saves a zero-init store + load).
    @pl.when(k == 0)
    def _():
        acc_ref[...] = partial

    @pl.when(k > 0)
    def _():
        acc_ref[...] += partial

    @pl.when(k == pl.num_programs(2) - 1)
    def _():
        o_ref[...] = acc_ref[...].astype(o_ref.dtype)


def _tiled_matmul(x2, w, out_dtype, tm, tn, tk, vmem_cap):
    M, K = x2.shape
    _, N = w.shape
    bx, bw = x2.dtype.itemsize, w.dtype.itemsize
    bo = jnp.dtype(out_dtype).itemsize

    # Tile sizes: full-extent blocks when a dim is smaller than the tile
    # (avoids padding entirely); otherwise (8, 128)-aligned tiles.
    tm = _round_up(min(tm, _round_up(M, 8)), 8)
    tk = K if K <= tk else _round_up(tk, 128)
    tn = N if N <= tn else _round_up(tn, 128)

    Mp, Kp, Np = _round_up(M, tm), _round_up(K, tk), _round_up(N, tn)
    if (Mp, Kp) != (M, K):
        x2 = jnp.pad(x2, ((0, Mp - M), (0, Kp - K)))
    if (Kp, Np) != (K, N):
        w = jnp.pad(w, ((0, Kp - K), (0, Np - N)))

    grid = (Mp // tm, Np // tn, Kp // tk)

    footprint = (2 * tm * tk * bx + 2 * tk * tn * bw
                 + 2 * tm * tn * bo + tm * tn * 4)
    vmem_limit = _vmem_limit(footprint, vmem_cap)

    out = pl.pallas_call(
        _matmul_kernel,
        out_shape=jax.ShapeDtypeStruct((Mp, Np), out_dtype),
        grid_spec=pltpu.PrefetchScalarGridSpec(
            num_scalar_prefetch=0,
            grid=grid,
            in_specs=[
                pl.BlockSpec((tm, tk), lambda i, j, k: (i, k)),  # x tile
                pl.BlockSpec((tk, tn), lambda i, j, k: (k, j)),  # weight tile
            ],
            out_specs=pl.BlockSpec((tm, tn), lambda i, j, k: (i, j)),
            scratch_shapes=[pltpu.VMEM((tm, tn), jnp.float32)],
        ),
        compiler_params=pltpu.CompilerParams(
            dimension_semantics=("parallel", "parallel", "arbitrary"),
            vmem_limit_bytes=vmem_limit,
        ),
        cost_estimate=pl.CostEstimate(
            flops=2 * Mp * Np * Kp,
            transcendentals=0,
            bytes_accessed=(Mp * Kp * bx * (Np // tn)
                            + Kp * Np * bw * (Mp // tm)
                            + Mp * Np * bo),
        ),
    )(x2, w)

    if (Mp, Np) != (M, N):
        out = out[:M, :N]
    return out


# ---------------------------------------------------------------------------
# Public wrapper == share_Linear(weight).forward(x)
# ---------------------------------------------------------------------------
def share_linear(x, weight, *, compute_dtype=None, tm=None, tn=None, tk=None,
                 weight_resident_bytes=None):
    """y = x @ weight  (== F.linear(x, weight.t(), bias=None))."""
    orig_shape = x.shape
    in_features = orig_shape[-1]
    k_w, out_features = weight.shape
    assert in_features == k_w, "share_Linear: input last dim must equal in_features"

    # Torch type promotion of (x, weight); no bias.  If compute_dtype is set
    # (e.g. bf16) the MXU operands are cast but accumulation stays f32 and the
    # output keeps the promoted dtype.
    out_dtype = jnp.result_type(x.dtype, weight.dtype)

    x2 = x.reshape(-1, in_features)
    w = weight
    if compute_dtype is not None:
        x2 = x2.astype(compute_dtype)
        w = w.astype(compute_dtype)

    M, K = x2.shape
    N = out_features
    bx, bw = x2.dtype.itemsize, w.dtype.itemsize
    bo = jnp.dtype(out_dtype).itemsize

    vmem_cap = _vmem_capacity_bytes()
    d_tm, d_tn, d_tk = _default_tiles(vmem_cap)
    tm = d_tm if tm is None else tm
    tn = d_tn if tn is None else tn
    tk = d_tk if tk is None else tk

    if weight_resident_bytes is None:
        weight_resident_bytes = min(vmem_cap // 4, 16 << 20)

    # ---- Weight-resident fast path (small shared weights, e.g. 20x30) -------
    tm_fast = min(_round_up(tm, 8), _round_up(M, 8))

    def _fast_footprint(t):
        return 2 * K * N * bw + 2 * t * (K * bx + N * bo)

    while tm_fast > 8 and _fast_footprint(tm_fast) > weight_resident_bytes:
        tm_fast = _round_up(tm_fast // 2, 8)

    if _fast_footprint(tm_fast) <= weight_resident_bytes:
        out = _resident_weight_matmul(x2, w, out_dtype, tm_fast, vmem_cap)
    else:
        out = _tiled_matmul(x2, w, out_dtype, tm, tn, tk, vmem_cap)

    return out.reshape(*orig_shape[:-1], out_features)


if __name__ == "__main__":
    key = jax.random.PRNGKey(0)
    kx1, kw1, kx2, kw2 = jax.random.split(key, 4)

    # 1) Module docstring example: weight (20, 30), input (128, 20).
    #    Small shared weight -> weight-resident fast path (no padding of K/N).
    in_features, out_features, n_rows = 20, 30, 128
    w1 = jax.random.normal(kw1, (in_features, out_features), jnp.float32)
    x1 = jax.random.normal(kx1, (n_rows, in_features), jnp.float32)
    out1 = jax.block_until_ready(share_linear(x1, w1))
    ref1 = x1 @ w1
    assert out1.shape == (n_rows, out_features)
    assert jnp.allclose(out1, ref1, atol=1e-4, rtol=1e-4), "fast path mismatch"

    # 2) Force the general tiled path (multi-block M/N, multi-step K reduction
    #    with the f32 accumulator) on a small, aligned shape.
    M, K, N = 256, 384, 512
    xb = jax.random.normal(kx2, (M, K), jnp.float32) * 0.05
    wb = jax.random.normal(kw2, (K, N), jnp.float32) * 0.05
    out2 = jax.block_until_ready(
        share_linear(xb, wb, tm=128, tn=256, tk=128, weight_resident_bytes=0))
    ref2 = xb @ wb
    assert out2.shape == (M, N)
    assert jnp.allclose(out2, ref2, atol=1e-3, rtol=1e-3), "tiled path mismatch"

    # 3) bf16-compute path (native MXU dtype, f32 accumulation) — loose check.
    out3 = jax.block_until_ready(share_linear(x1, w1, compute_dtype=jnp.bfloat16))
    assert out3.shape == (n_rows, out_features)
    assert jnp.allclose(out3, ref1, atol=1e-1, rtol=1e-1), "bf16 path mismatch"

    print("KERNEL_OK")
</pallas_src>

<mosaic_0001>
module attributes {stable_mosaic.version = 11 : i64} {
  func.func @_resident_weight_kernel(%arg0: i32, %arg1: memref<128x20xf32, #tpu.memory_space<vmem>>, %arg2: memref<20x30xf32, #tpu.memory_space<vmem>>, %arg3: memref<128x30xf32, #tpu.memory_space<vmem>>) attributes {dimension_semantics = [#tpu.dimension_semantics<parallel>], iteration_bounds = array<i64: 1>, scalar_prefetch = 0 : i64, scratch_operands = 0 : i64, tpu.core_type = #tpu.core_type<tc>, window_params = [{transform_indices = @transform_0, window_bounds = array<i64: 128, 20>}, {pipeline_mode = #tpu.pipeline_mode<synchronous>, transform_indices = @transform_1, window_bounds = array<i64: 20, 30>}, {transform_indices = @transform_2, window_bounds = array<i64: 128, 30>}]} {
    %c0 = arith.constant 0 : index
    %c0_0 = arith.constant 0 : index
    %0 = vector.load %arg1[%c0, %c0_0] : memref<128x20xf32, #tpu.memory_space<vmem>>, vector<128x20xf32>
    %c0_1 = arith.constant 0 : index
    %c0_2 = arith.constant 0 : index
    %1 = vector.load %arg2[%c0_1, %c0_2] : memref<20x30xf32, #tpu.memory_space<vmem>>, vector<20x30xf32>
    %cst = arith.constant dense<0.000000e+00> : vector<128x30xf32>
    %2 = tpu.matmul %0, %1, %cst {dimension_numbers = #tpu.dot_dimension_numbers<[1], [0], [0], [1], [0, 0, 1, 1], [], []>} : vector<128x20xf32>, vector<20x30xf32>, vector<128x30xf32> -> vector<128x30xf32>
    %c0_3 = arith.constant 0 : index
    %c0_4 = arith.constant 0 : index
    %3 = vector.load %arg3[%c0_3, %c0_4] : memref<128x30xf32, #tpu.memory_space<vmem>>, vector<128x30xf32>
    tpu.vector_store %arg3[%c0_3, %c0_4], %2 {strides = array<i32>} : memref<128x30xf32, #tpu.memory_space<vmem>>, vector<128x30xf32>,
    return
  }
  func.func @transform_0(%arg0: i32) -> (i32, i32) {
    %c0_i32 = arith.constant 0 : i32
    %c0_i32_0 = arith.constant 0 : i32
    return %arg0, %c0_i32 : i32, i32
  }
  func.func @transform_1(%arg0: i32) -> (i32, i32) {
    %c0_i32 = arith.constant 0 : i32
    %c0_i32_0 = arith.constant 0 : i32
    %c0_i32_1 = arith.constant 0 : i32
    return %c0_i32, %c0_i32_0 : i32, i32
  }
  func.func @transform_2(%arg0: i32) -> (i32, i32) {
    %c0_i32 = arith.constant 0 : i32
    %c0_i32_0 = arith.constant 0 : i32
    return %arg0, %c0_i32 : i32, i32
  }
}

</mosaic_0001>

<bundles_post_ra>
// kernel: tpu_custom_call.1
= control target key start
LH: loop header
LB: loop body
LE: loop exit
PB: predicated region body
PF: predicated region fallthrough
CT: control target
= control target key end

     0   :  { %vm79_vm0 = vcmask 1043456   ;;  %vm30_vm1 = vcmask 162816   ;;  %vm228_vm2 = vcmask 244736   ;;  %s473_s1 = inlined_call_operand.vmem [shape: f32[20,30], index: 1, kind: input, shape index: {}]   ;;  %s474_s0 = inlined_call_operand.vmem [shape: f32[128,20], index: 0, kind: input, shape index: {}]   ;;  %s475_s2 = inlined_call_operand.vmem [shape: f32[128,30], index: 2, kind: output, shape index: {}]  }
   0x1   :  { %v29_v0 = vld [vmem:[%s473_s1 + $0x10] sm:$0xf]  ;;  %v28_v1 = vld [vmem:[%s473_s1 + $0x8] sm:$0xff]  ;;  %v27_v2 = vld [vmem:[%s473_s1] sm:$0xff] }
   0x2   :  { %285 = vmatprep.subr.msk.mxu0 %vm79_vm0, %v29_v0  ;;  %315 = vmatprep.subr.msk.mxu1 %vm79_vm0, %v29_v0  ;;  %v11_v3 = vld [vmem:[%s474_s0] sm:$0xff]  ;;  %v12_v5 = vld [vmem:[%s474_s0 + $0x8] sm:$0xff]  ;;  %v13_v7 = vld [vmem:[%s474_s0 + $0x10] sm:$0xff] }
   0x3   :  { %286 = vmatpush3.msk.msra.mxu0 %vm79_vm0, %v29_v0  ;;  %318 = vmatpush3.msk.msra.mxu1 %vm79_vm0, %v29_v0  ;;  %v19_v4 = vld [vmem:[%s474_s0 + $0x40] sm:$0xff]  ;;  %v20_v6 = vld [vmem:[%s474_s0 + $0x48] sm:$0xff]  ;;  %v21_v8 = vld [vmem:[%s474_s0 + $0x50] sm:$0xff] }
   0x4   :  { %287 = vmatprep.subr.mxu0 %v28_v1  ;;  %316 = vmatprep.subr.mxu1 %v28_v1  ;;  %v14_v9 = vld [vmem:[%s474_s0 + $0x18] sm:$0xff]  ;;  %v15_v11 = vld [vmem:[%s474_s0 + $0x20] sm:$0xff]  ;;  %v16_v13 = vld [vmem:[%s474_s0 + $0x28] sm:$0xff] }
   0x5   :  { %288 = vmatpush3.msra.mxu0 %v28_v1  ;;  %319 = vmatpush3.msra.mxu1 %v28_v1  ;;  %v22_v10 = vld [vmem:[%s474_s0 + $0x58] sm:$0xff]  ;;  %v23_v12 = vld [vmem:[%s474_s0 + $0x60] sm:$0xff]  ;;  %v24_v14 = vld [vmem:[%s474_s0 + $0x68] sm:$0xff] }
   0x6   :  { %289 = vmatprep.subr.mxu0 %v27_v2  ;;  %317 = vmatprep.subr.mxu1 %v27_v2  ;;  %v17_v15 = vld [vmem:[%s474_s0 + $0x30] sm:$0xff]  ;;  %v18_v17 = vld [vmem:[%s474_s0 + $0x38] sm:$0xff] }
   0x7   :  { %290 = vmatpush3.msra.mxu0 %v27_v2  ;;  %320 = vmatpush3.msra.mxu1 %v27_v2  ;;  %v25_v16 = vld [vmem:[%s474_s0 + $0x70] sm:$0xff]  ;;  %v26_v18 = vld [vmem:[%s474_s0 + $0x78] sm:$0xff] }
   0x8   :  { %291 = vmatprep.mubr.msk.f32.mxu0 %vm30_vm1, %v11_v3  ;;  %303 = vmatprep.mubr.msk.f32.mxu1 %vm30_vm1, %v19_v4 }
   0x9   :  { %292 = vmatmul.mubr.msk.f32.vlgmr.msra.gmra.mxu0 %vm30_vm1, %v12_v5  ;;  %304 = vmatmul.mubr.msk.f32.vlgmr.msra.gmra.mxu1 %vm30_vm1, %v20_v6 }
   0xa   :  { %294 = vmatprep.mubr.msk.f32.mxu0 %vm30_vm1, %v13_v7  ;;  %306 = vmatprep.mubr.msk.f32.mxu1 %vm30_vm1, %v21_v8 }
   0xd   :  { %295 = vmatmul.mubr.msk.f32.gmra.mxu0 %vm30_vm1, %v14_v9  ;;  %307 = vmatmul.mubr.msk.f32.gmra.mxu1 %vm30_vm1, %v22_v10 }
   0xe   :  { %297 = vmatprep.mubr.msk.f32.mxu0 %vm30_vm1, %v15_v11  ;;  %309 = vmatprep.mubr.msk.f32.mxu1 %vm30_vm1, %v23_v12 }
  0x11   :  { %298 = vmatmul.mubr.msk.f32.gmra.mxu0 %vm30_vm1, %v16_v13  ;;  %310 = vmatmul.mubr.msk.f32.gmra.mxu1 %vm30_vm1, %v24_v14 }
  0x12   :  { %300 = vmatprep.mubr.msk.f32.mxu0 %vm30_vm1, %v17_v15  ;;  %312 = vmatprep.mubr.msk.f32.mxu1 %vm30_vm1, %v25_v16 }
  0x15   :  { %301 = vmatmul.mubr.msk.f32.gmra.mxu0 %vm30_vm1, %v18_v17  ;;  %313 = vmatmul.mubr.msk.f32.gmra.mxu1 %vm30_vm1, %v26_v18 }
  0xc9   :  { %v293_v19 = vpop.f32.mrf.mxu0  ;;  %v305_v20 = vpop.f32.mrf.mxu1 }
  0xca   :  { %230 = vst.msk [vmem:[%s475_s2 + $0x8] sm:$0xff] %vm228_vm2, %v293_v19  ;;  %238 = vst.msk [vmem:[%s475_s2 + $0x48] sm:$0xff] %vm228_vm2, %v305_v20 }
  0xcb   :  { %v149_v21 = vpop.f32.mrf.mxu0  ;;  %v189_v22 = vpop.f32.mrf.mxu1 }
  0xcc   :  { %229 = vst.msk [vmem:[%s475_s2] sm:$0xff] %vm228_vm2, %v149_v21  ;;  %237 = vst.msk [vmem:[%s475_s2 + $0x40] sm:$0xff] %vm228_vm2, %v189_v22 }
  0xcd   :  { %v296_v23 = vpop.f32.mrf.mxu0  ;;  %v308_v24 = vpop.f32.mrf.mxu1 }
  0xce   :  { %232 = vst.msk [vmem:[%s475_s2 + $0x18] sm:$0xff] %vm228_vm2, %v296_v23  ;;  %240 = vst.msk [vmem:[%s475_s2 + $0x58] sm:$0xff] %vm228_vm2, %v308_v24 }
  0xcf   :  { %v159_v25 = vpop.f32.mrf.mxu0  ;;  %v199_v26 = vpop.f32.mrf.mxu1 }
  0xd0   :  { %231 = vst.msk [vmem:[%s475_s2 + $0x10] sm:$0xff] %vm228_vm2, %v159_v25  ;;  %239 = vst.msk [vmem:[%s475_s2 + $0x50] sm:$0xff] %vm228_vm2, %v199_v26 }
  0xd1   :  { %v299_v27 = vpop.f32.mrf.mxu0  ;;  %v311_v28 = vpop.f32.mrf.mxu1 }
  0xd2   :  { %234 = vst.msk [vmem:[%s475_s2 + $0x28] sm:$0xff] %vm228_vm2, %v299_v27  ;;  %242 = vst.msk [vmem:[%s475_s2 + $0x68] sm:$0xff] %vm228_vm2, %v311_v28 }
  0xd3   :  { %v169_v29 = vpop.f32.mrf.mxu0  ;;  %v209_v30 = vpop.f32.mrf.mxu1 }
  0xd4   :  { %233 = vst.msk [vmem:[%s475_s2 + $0x20] sm:$0xff] %vm228_vm2, %v169_v29  ;;  %241 = vst.msk [vmem:[%s475_s2 + $0x60] sm:$0xff] %vm228_vm2, %v209_v30 }
  0xd5   :  { %v302_v31 = vpop.f32.mrf.mxu0  ;;  %v314_v32 = vpop.f32.mrf.mxu1 }
  0xd6   :  { %236 = vst.msk [vmem:[%s475_s2 + $0x38] sm:$0xff] %vm228_vm2, %v302_v31  ;;  %244 = vst.msk [vmem:[%s475_s2 + $0x78] sm:$0xff] %vm228_vm2, %v314_v32 }
  0xd7   :  { %v179_v33 = vpop.f32.mrf.mxu0  ;;  %v219_v34 = vpop.f32.mrf.mxu1 }
  0xd8   :  { %235 = vst.msk [vmem:[%s475_s2 + $0x30] sm:$0xff] %vm228_vm2, %v179_v33  ;;  %243 = vst.msk [vmem:[%s475_s2 + $0x70] sm:$0xff] %vm228_vm2, %v219_v34 }

</bundles_post_ra>
